<compile_context>
chip_gen: v6e
topology: v6e:2x2x1
jax: 0.10.0
libtpu: 0.0.40
codegen_flags: <defaults>
</compile_context>

<pallas_src>
import functools

import jax
import jax.numpy as jnp
import numpy as np
from jax.experimental import pallas as pl
from jax.experimental.pallas import tpu as pltpu


# ------------------------------- Pallas kernel -------------------------------

def _resblock_kernel(cols_ref, res_ref, w1_ref, b1_ref, w2_ref, b2_ref, o_ref,
                     *, compute_dtype):
    """Fused ResBlock on one (channels x pixel-tile) block.

    cols_ref: (Cin*9, TM)  im2col'ed, zero-padded input (pixel axis = lanes)
    res_ref : (Cin,   TM)  residual (raw input tile)
    w1_ref  : (Cres, Cin*9), b1_ref: (Cres, 1)
    w2_ref  : (Cin,  Cres),  b2_ref: (Cin, 1)
    o_ref   : (Cin,   TM)
    """
    cast = jnp.dtype(compute_dtype) != jnp.dtype(jnp.float32)

    # ReLU before the 3x3 conv; ReLU(pad(x)) == pad(ReLU(x)) since ReLU(0)==0.
    a = jnp.maximum(cols_ref[...], 0.0)
    w1 = w1_ref[...]
    if cast:
        a = a.astype(compute_dtype)
        w1 = w1.astype(compute_dtype)
    h = jnp.dot(w1, a, preferred_element_type=jnp.float32)       # (Cres, TM) on MXU
    h = jnp.maximum(h + b1_ref[...], 0.0)                        # bias + ReLU in f32

    w2 = w2_ref[...]
    if cast:
        h = h.astype(compute_dtype)
        w2 = w2.astype(compute_dtype)
    out = jnp.dot(w2, h, preferred_element_type=jnp.float32)     # (Cin, TM) on MXU
    out = out + b2_ref[...] + res_ref[...]                       # bias + residual add
    o_ref[...] = out.astype(o_ref.dtype)


# --------------------------------- wrappers ----------------------------------

def _im2col_transposed(x, kh=3, kw=3, pad=1):
    """NCHW -> (B, Cin*kh*kw, H*W); rows ordered (c, tap), columns ordered (h, w).

    Matches w.reshape(Cout, Cin*kh*kw) column order and x.reshape(B, C, H*W)
    pixel order, so no transposes are needed anywhere.
    """
    B, C, H, W = x.shape
    xp = jnp.pad(x, ((0, 0), (0, 0), (pad, pad), (pad, pad)))
    taps = [xp[:, :, i:i + H, j:j + W] for i in range(kh) for j in range(kw)]
    cols = jnp.stack(taps, axis=2)                # (B, C, kh*kw, H, W)
    return cols.reshape(B, C * kh * kw, H * W)


def _pick_tile(hw):
    """Largest pixel tile <= 512 that is a multiple of 128 and divides H*W."""
    if hw % 128 != 0:
        return hw                                  # fallback: single block
    for cand in (512, 384, 256, 128):
        if hw % cand == 0:
            return cand
    return hw


def resblock_forward(params, x, *, compute_dtype=jnp.float32):
    """Pallas ResBlock forward.  x: (B, Cin, H, W) float32 (NCHW, as in PyTorch)."""
    B, C, H, W = x.shape
    Cres = params['w1'].shape[0]
    K = C * 9
    HW = H * W
    tm = _pick_tile(HW)

    cols = _im2col_transposed(x)                   # (B, K, HW)
    res = x.reshape(B, C, HW)                      # free reshape, no transpose
    w1m = params['w1'].reshape(Cres, K)
    b1 = params['b1'].reshape(Cres, 1)
    w2m = params['w2'].reshape(C, Cres)
    b2 = params['b2'].reshape(C, 1)

    # Explicit VMEM budget: double-buffered activation blocks + resident weights,
    # clamped well under v7x's 64 MiB per-core VMEM.
    act_block_bytes = 4 * tm * (K + 2 * C)
    weight_bytes = 4 * (Cres * K + C * Cres + Cres + C)
    vmem_limit = int(min(max(4 * act_block_bytes + 2 * weight_bytes, 4 << 20),
                         32 << 20))

    kernel = functools.partial(_resblock_kernel, compute_dtype=compute_dtype)
    out = pl.pallas_call(
        kernel,
        out_shape=jax.ShapeDtypeStruct((B, C, HW), x.dtype),
        grid=(B, HW // tm),
        in_specs=[
            pl.BlockSpec((None, K, tm), lambda b, m: (b, 0, m)),   # im2col tile
            pl.BlockSpec((None, C, tm), lambda b, m: (b, 0, m)),   # residual tile
            pl.BlockSpec((Cres, K), lambda b, m: (0, 0)),          # w1 (resident)
            pl.BlockSpec((Cres, 1), lambda b, m: (0, 0)),          # b1 (resident)
            pl.BlockSpec((C, Cres), lambda b, m: (0, 0)),          # w2 (resident)
            pl.BlockSpec((C, 1), lambda b, m: (0, 0)),             # b2 (resident)
        ],
        out_specs=pl.BlockSpec((None, C, tm), lambda b, m: (b, 0, m)),
        compiler_params=pltpu.CompilerParams(
            dimension_semantics=("parallel", "parallel"),
            vmem_limit_bytes=vmem_limit),
    )(cols, res, w1m, b1, w2m, b2)
    return out.reshape(B, C, H, W)


# ------------------------------ pure-JAX reference ---------------------------

def resblock_reference(params, x):
    h = jax.nn.relu(x)
    h = jax.lax.conv_general_dilated(h, params['w1'], (1, 1), ((1, 1), (1, 1)),
                                     dimension_numbers=('NCHW', 'OIHW', 'NCHW'))
    h = h + params['b1'][None, :, None, None]
    h = jax.nn.relu(h)
    h = jax.lax.conv_general_dilated(h, params['w2'], (1, 1), ((0, 0), (0, 0)),
                                     dimension_numbers=('NCHW', 'OIHW', 'NCHW'))
    h = h + params['b2'][None, :, None, None]
    return h + x


def init_params(key, in_channel, channel):
    k1, k2, k3, k4 = jax.random.split(key, 4)
    return {
        'w1': jax.random.normal(k1, (channel, in_channel, 3, 3), jnp.float32) * 0.05,
        'b1': jax.random.normal(k2, (channel,), jnp.float32) * 0.05,
        'w2': jax.random.normal(k3, (in_channel, channel, 1, 1), jnp.float32) * 0.05,
        'b2': jax.random.normal(k4, (in_channel,), jnp.float32) * 0.05,
    }


# ----------------------------------- main -------------------------------------

if __name__ == "__main__":
    # ResBlock(in_channel=32, channel=8), as used inside the VQVAE encoder/decoder.
    IN_CHANNEL, CHANNEL = 32, 8
    B, H, W = 2, 16, 16

    key = jax.random.PRNGKey(0)
    pkey, xkey = jax.random.split(key)
    params = init_params(pkey, IN_CHANNEL, CHANNEL)
    x = jax.random.normal(xkey, (B, IN_CHANNEL, H, W), jnp.float32)

    ref = resblock_reference(params, x)

    # f32 path
    fwd = jax.jit(resblock_forward)
    out = fwd(params, x)
    jax.block_until_ready(out)
    assert out.shape == (B, IN_CHANNEL, H, W)
    np.testing.assert_allclose(np.asarray(out), np.asarray(ref), rtol=1e-2, atol=1e-2)

    # bf16 MXU operands, f32 accumulation -- the v6e/v7x fast path.
    fwd_bf16 = jax.jit(functools.partial(resblock_forward,
                                         compute_dtype=jnp.bfloat16))
    out_bf16 = fwd_bf16(params, x)
    jax.block_until_ready(out_bf16)
    np.testing.assert_allclose(np.asarray(out_bf16), np.asarray(ref),
                               rtol=5e-2, atol=5e-2)

    print("KERNEL_OK")
</pallas_src>

<mosaic_0001>
module attributes {stable_mosaic.version = 11 : i64} {
  func.func @_resblock_kernel(%arg0: i32, %arg1: i32, %arg2: memref<1x288x256xf32, #tpu.memory_space<vmem>>, %arg3: memref<1x32x256xf32, #tpu.memory_space<vmem>>, %arg4: memref<8x288xf32, #tpu.memory_space<vmem>>, %arg5: memref<8x1xf32, #tpu.memory_space<vmem>>, %arg6: memref<32x8xf32, #tpu.memory_space<vmem>>, %arg7: memref<32x1xf32, #tpu.memory_space<vmem>>, %arg8: memref<1x32x256xf32, #tpu.memory_space<vmem>>) attributes {dimension_semantics = [#tpu.dimension_semantics<parallel>, #tpu.dimension_semantics<parallel>], iteration_bounds = array<i64: 2, 1>, scalar_prefetch = 0 : i64, scratch_operands = 0 : i64, tpu.core_type = #tpu.core_type<tc>, window_params = [{transform_indices = @transform_0, window_bounds = array<i64: 1, 288, 256>}, {transform_indices = @transform_1, window_bounds = array<i64: 1, 32, 256>}, {pipeline_mode = #tpu.pipeline_mode<synchronous>, transform_indices = @transform_2, window_bounds = array<i64: 8, 288>}, {pipeline_mode = #tpu.pipeline_mode<synchronous>, transform_indices = @transform_3, window_bounds = array<i64: 8, 1>}, {pipeline_mode = #tpu.pipeline_mode<synchronous>, transform_indices = @transform_4, window_bounds = array<i64: 32, 8>}, {pipeline_mode = #tpu.pipeline_mode<synchronous>, transform_indices = @transform_5, window_bounds = array<i64: 32, 1>}, {transform_indices = @transform_6, window_bounds = array<i64: 1, 32, 256>}]} {
    %c0 = arith.constant 0 : index
    %c0_0 = arith.constant 0 : index
    %c0_1 = arith.constant 0 : index
    %0 = vector.load %arg2[%c0, %c0_0, %c0_1] : memref<1x288x256xf32, #tpu.memory_space<vmem>>, vector<1x288x256xf32>
    %1 = vector.shape_cast %0 : vector<1x288x256xf32> to vector<288x256xf32>
    %cst = arith.constant 0.000000e+00 : f32
    %2 = vector.broadcast %cst : f32 to vector<288x256xf32>
    %3 = arith.maximumf %1, %2 : vector<288x256xf32>
    %c0_2 = arith.constant 0 : index
    %c0_3 = arith.constant 0 : index
    %4 = vector.load %arg4[%c0_2, %c0_3] : memref<8x288xf32, #tpu.memory_space<vmem>>, vector<8x288xf32>
    %cst_4 = arith.constant dense<0.000000e+00> : vector<8x256xf32>
    %5 = tpu.matmul %4, %3, %cst_4 {dimension_numbers = #tpu.dot_dimension_numbers<[1], [0], [0], [1], [0, 0, 1, 1], [], []>} : vector<8x288xf32>, vector<288x256xf32>, vector<8x256xf32> -> vector<8x256xf32>
    %c0_5 = arith.constant 0 : index
    %c0_6 = arith.constant 0 : index
    %6 = vector.load %arg5[%c0_5, %c0_6] : memref<8x1xf32, #tpu.memory_space<vmem>>, vector<8x1xf32>
    %7 = vector.broadcast %6 : vector<8x1xf32> to vector<8x256xf32>
    %8 = arith.addf %5, %7 : vector<8x256xf32>
    %cst_7 = arith.constant 0.000000e+00 : f32
    %9 = vector.broadcast %cst_7 : f32 to vector<8x256xf32>
    %10 = arith.maximumf %8, %9 : vector<8x256xf32>
    %c0_8 = arith.constant 0 : index
    %c0_9 = arith.constant 0 : index
    %11 = vector.load %arg6[%c0_8, %c0_9] : memref<32x8xf32, #tpu.memory_space<vmem>>, vector<32x8xf32>
    %cst_10 = arith.constant dense<0.000000e+00> : vector<32x256xf32>
    %12 = tpu.matmul %11, %10, %cst_10 {dimension_numbers = #tpu.dot_dimension_numbers<[1], [0], [0], [1], [0, 0, 1, 1], [], []>} : vector<32x8xf32>, vector<8x256xf32>, vector<32x256xf32> -> vector<32x256xf32>
    %c0_11 = arith.constant 0 : index
    %c0_12 = arith.constant 0 : index
    %13 = vector.load %arg7[%c0_11, %c0_12] : memref<32x1xf32, #tpu.memory_space<vmem>>, vector<32x1xf32>
    %14 = vector.broadcast %13 : vector<32x1xf32> to vector<32x256xf32>
    %15 = arith.addf %12, %14 : vector<32x256xf32>
    %c0_13 = arith.constant 0 : index
    %c0_14 = arith.constant 0 : index
    %c0_15 = arith.constant 0 : index
    %16 = vector.load %arg3[%c0_13, %c0_14, %c0_15] : memref<1x32x256xf32, #tpu.memory_space<vmem>>, vector<1x32x256xf32>
    %17 = vector.shape_cast %16 : vector<1x32x256xf32> to vector<32x256xf32>
    %18 = arith.addf %15, %17 : vector<32x256xf32>
    %c0_16 = arith.constant 0 : index
    %c0_17 = arith.constant 0 : index
    %c0_18 = arith.constant 0 : index
    %19 = vector.load %arg8[%c0_16, %c0_17, %c0_18] : memref<1x32x256xf32, #tpu.memory_space<vmem>>, vector<1x32x256xf32>
    %20 = vector.shape_cast %19 : vector<1x32x256xf32> to vector<32x256xf32>
    %21 = vector.shape_cast %18 : vector<32x256xf32> to vector<1x32x256xf32>
    tpu.vector_store %arg8[%c0_16, %c0_17, %c0_18], %21 {strides = array<i32>} : memref<1x32x256xf32, #tpu.memory_space<vmem>>, vector<1x32x256xf32>,
    return
  }
  func.func @transform_0(%arg0: i32, %arg1: i32) -> (i32, i32, i32) {
    %c0_i32 = arith.constant 0 : i32
    %c0_i32_0 = arith.constant 0 : i32
    return %arg0, %c0_i32, %arg1 : i32, i32, i32
  }
  func.func @transform_1(%arg0: i32, %arg1: i32) -> (i32, i32, i32) {
    %c0_i32 = arith.constant 0 : i32
    %c0_i32_0 = arith.constant 0 : i32
    return %arg0, %c0_i32, %arg1 : i32, i32, i32
  }
  func.func @transform_2(%arg0: i32, %arg1: i32) -> (i32, i32) {
    %c0_i32 = arith.constant 0 : i32
    %c0_i32_0 = arith.constant 0 : i32
    %c0_i32_1 = arith.constant 0 : i32
    return %c0_i32, %c0_i32_0 : i32, i32
  }
  func.func @transform_3(%arg0: i32, %arg1: i32) -> (i32, i32) {
    %c0_i32 = arith.constant 0 : i32
    %c0_i32_0 = arith.constant 0 : i32
    %c0_i32_1 = arith.constant 0 : i32
    return %c0_i32, %c0_i32_0 : i32, i32
  }
  func.func @transform_4(%arg0: i32, %arg1: i32) -> (i32, i32) {
    %c0_i32 = arith.constant 0 : i32
    %c0_i32_0 = arith.constant 0 : i32
    %c0_i32_1 = arith.constant 0 : i32
    return %c0_i32, %c0_i32_0 : i32, i32
  }
  func.func @transform_5(%arg0: i32, %arg1: i32) -> (i32, i32) {
    %c0_i32 = arith.constant 0 : i32
    %c0_i32_0 = arith.constant 0 : i32
    %c0_i32_1 = arith.constant 0 : i32
    return %c0_i32, %c0_i32_0 : i32, i32
  }
  func.func @transform_6(%arg0: i32, %arg1: i32) -> (i32, i32, i32) {
    %c0_i32 = arith.constant 0 : i32
    %c0_i32_0 = arith.constant 0 : i32
    return %arg0, %c0_i32, %arg1 : i32, i32, i32
  }
}

</mosaic_0001>

<bundles_post_ra>
// kernel: resblock_forward.1
= control target key start
LH: loop header
LB: loop body
LE: loop exit
PB: predicated region body
PF: predicated region fallthrough
CT: control target
= control target key end

     0   :  { %s996_s21 = smov 0   ;;  %s998_s22 = smov 0   ;;  %s1171_s0 = inlined_call_operand.vmem [shape: f32[2,288,256], index: 0, kind: input, shape index: {}]   ;;  %s1172_s1 = inlined_call_operand.vmem [shape: f32[2,32,256], index: 1, kind: input, shape index: {}]   ;;  %s1173_s2 = inlined_call_operand.vmem [shape: f32[8,288], index: 2, kind: input, shape index: {}]   ;;  %s1174_s3 = inlined_call_operand.vmem [shape: f32[8,1], index: 3, kind: input, shape index: {}]   ;;  %s1175_s4 = inlined_call_operand.vmem [shape: f32[32,8], index: 4, kind: input, shape index: {}]   ;;  %s1176_s5 = inlined_call_operand.vmem [shape: f32[32,1], index: 5, kind: input, shape index: {}]   ;;  %s1177_s6 = inlined_call_operand.vmem [shape: f32[2,32,256], index: 6, kind: output, shape index: {}]  }
   0x1   :  { %s1000_s23 = smov 0  }
   0x2 LB: > { %s28_s24 = sadd.s32 1, %s953_s22  ;;  %p891_p0 = scmp.ge.s32.totalorder %s957_s23, 1  ;;  %s957_s23 = sphi %s1000_s23, %s16_s23   ;;  %s953_s22 = sphi %s998_s22, %s1179_s22   ;;  %s949_s21 = sphi %s996_s21, %s1178_s21  }
   0x3   : > { %p30_p1 = scmp.ge.s32.totalorder %s28_s24, 2  ;;  %p250_p2 = scmp.lt.s32.totalorder %s957_s23, 3 }
   0x5   : > { %s1181_s24 = smov (%p30_p1, %s28_s24), 0  ;;  %p251_p3 = pnand %p891_p0, %p250_p2 }
   0x6   : > { %p298_p4 = scmp.lt.s32.totalorder (!%p251_p3), %s949_s21, 1 }
   0x7   : > { %254 = sbr.rel (%p251_p3) target bundleno = 498 (0x1f2), region = 44 }
   0xc   : > { %v472_v0 = vld [vmem:[%s1173_s2 + $0x8] sm:$0xff]  ;;  %v959_v1 = vmov 0.0   ;;  %v474_v2 = vld [vmem:[%s1174_s3] sm:$0xff]  ;;  %s1183_s21 = smov (!%p298_p4, %s949_s21), 1  ;;  %v960_v3 = vmov 0   ;;  %v635_v5 = vld [vmem:[%s1176_s5 + $0x18] sm:$0xff] }
   0xd   : > { %548 = vmatprep.mubr.f32.mxu0 %v472_v0  ;;  %619 = vmatprep.mubr.f32.mxu1 %v959_v1  ;;  %s906_s29 = smul.u32 576, %s1183_s21  ;;  %v632_v4 = vld [vmem:[%s1176_s5] sm:$0xff]  ;;  %vm480_vm0 = vcmask 261120   ;;  %vm656_vm1 = vcmask 64512   ;;  %s904_s9 = sshll.u32 %s1183_s21, 6 }
   0xe   : > { %933 = vset.pattern.permute.xlu0 %v960_v3  ;;  %934 = vset.pattern.permute.xlu1 %v960_v3  ;;  %s1139_s12 = scalar_lea.vmem %s1172_s1, %s904_s9  ;;  %s1145_s15 = scalar_lea.vmem %s1177_s6, %s904_s9 }
   0xf   : > { %477 = vperm.xlu0 %933, %v474_v2   ;;  %s1030_s10 = scalar_lea.vmem %s1171_s0, %s906_s29 }
  0x10   : > { %v358_v6 = vld [vmem:[%s1030_s10 + $0xf8] sm:$0xff]  ;;  %v357_v7 = vld [vmem:[%s1030_s10 + $0xf0] sm:$0xff]  ;;  %v356_v8 = vld [vmem:[%s1030_s10 + $0xe8] sm:$0xff] }
  0x11   : > { %v430_v9 = vmax.f32 %v358_v6, 0.0  ;;  %v429_v10 = vmax.f32 %v357_v7, 0.0  ;;  %v428_v11 = vmax.f32 %v356_v8, 0.0  ;;  %v355_v12 = vld [vmem:[%s1030_s10 + $0xe0] sm:$0xff]  ;;  %v354_v13 = vld [vmem:[%s1030_s10 + $0xd8] sm:$0xff]  ;;  %v353_v14 = vld [vmem:[%s1030_s10 + $0xd0] sm:$0xff] }
  0x12   : > { %v427_v15 = vmax.f32 %v355_v12, 0.0  ;;  %v352_v16 = vld [vmem:[%s1030_s10 + $0xc8] sm:$0xff]  ;;  %v426_v17 = vmax.f32 %v354_v13, 0.0  ;;  %v351_v18 = vld [vmem:[%s1030_s10 + $0xc0] sm:$0xff]  ;;  %v425_v19 = vmax.f32 %v353_v14, 0.0  ;;  %v350_v20 = vld [vmem:[%s1030_s10 + $0xb8] sm:$0xff] }
  0x13   : > { %638 = vperm.xlu0 %933, %v632_v4   ;;  %484 = vmatprep.subr.mxu0 %v430_v9  ;;  %v424_v21 = vmax.f32 %v352_v16, 0.0  ;;  %v349_v22 = vld [vmem:[%s1030_s10 + $0xb0] sm:$0xff]  ;;  %v423_v23 = vmax.f32 %v351_v18, 0.0  ;;  %v348_v24 = vld [vmem:[%s1030_s10 + $0xa8] sm:$0xff]  ;;  %v422_v25 = vmax.f32 %v350_v20, 0.0  ;;  %v347_v26 = vld [vmem:[%s1030_s10 + $0xa0] sm:$0xff] }
  0x14   : > { %485 = vmatpush1.msra.mxu0 %v429_v10  ;;  %v421_v27 = vmax.f32 %v349_v22, 0.0  ;;  %v346_v28 = vld [vmem:[%s1030_s10 + $0x98] sm:$0xff]  ;;  %v420_v29 = vmax.f32 %v348_v24, 0.0  ;;  %v345_v30 = vld [vmem:[%s1030_s10 + $0x90] sm:$0xff]  ;;  %v419_v31 = vmax.f32 %v347_v26, 0.0  ;;  %v344_v32 = vld [vmem:[%s1030_s10 + $0x88] sm:$0xff] }
  0x15   : > { %486 = vmatprep.subr.mxu0 %v428_v11  ;;  %v418_v33 = vmax.f32 %v346_v28, 0.0  ;;  %v343_v34 = vld [vmem:[%s1030_s10 + $0x80] sm:$0xff]  ;;  %v417_v35 = vmax.f32 %v345_v30, 0.0  ;;  %v342_v36 = vld [vmem:[%s1030_s10 + $0x78] sm:$0xff]  ;;  %v416_v37 = vmax.f32 %v344_v32, 0.0  ;;  %v341_v38 = vld [vmem:[%s1030_s10 + $0x70] sm:$0xff] }
  0x16   : > { %487 = vmatpush1.msra.mxu0 %v427_v15  ;;  %v415_v39 = vmax.f32 %v343_v34, 0.0  ;;  %v340_v40 = vld [vmem:[%s1030_s10 + $0x68] sm:$0xff]  ;;  %v414_v41 = vmax.f32 %v342_v36, 0.0  ;;  %v339_v42 = vld [vmem:[%s1030_s10 + $0x60] sm:$0xff]  ;;  %v413_v43 = vmax.f32 %v341_v38, 0.0  ;;  %v338_v44 = vld [vmem:[%s1030_s10 + $0x58] sm:$0xff] }
  0x17   : > { %653 = vperm.xlu0 %933, %v635_v5   ;;  %488 = vmatprep.subr.mxu0 %v426_v17  ;;  %v412_v45 = vmax.f32 %v340_v40, 0.0  ;;  %v337_v46 = vld [vmem:[%s1030_s10 + $0x50] sm:$0xff]  ;;  %v411_v47 = vmax.f32 %v339_v42, 0.0  ;;  %v336_v48 = vld [vmem:[%s1030_s10 + $0x48] sm:$0xff]  ;;  %v410_v49 = vmax.f32 %v338_v44, 0.0  ;;  %v335_v50 = vld [vmem:[%s1030_s10 + $0x40] sm:$0xff] }
  0x18   : > { %489 = vmatpush1.msra.mxu0 %v425_v19  ;;  %v398_v51 = vld [vmem:[%s1030_s10 + $0x238] sm:$0xff]  ;;  %v397_v52 = vld [vmem:[%s1030_s10 + $0x230] sm:$0xff]  ;;  %v409_v53 = vmax.f32 %v337_v46, 0.0  ;;  %v396_v57 = vld [vmem:[%s1030_s10 + $0x228] sm:$0xff]  ;;  %v408_v58 = vmax.f32 %v336_v48, 0.0  ;;  %v407_v63 = vmax.f32 %v335_v50, 0.0 }
  0x19   : > { %490 = vmatprep.subr.mxu0 %v424_v21  ;;  %v334_v54 = vld [vmem:[%s1030_s10 + $0x38] sm:$0xff]  ;;  %v470_v55 = vmax.f32 %v398_v51, 0.0  ;;  %v469_v56 = vmax.f32 %v397_v52, 0.0  ;;  %v333_v59 = vld [vmem:[%s1030_s10 + $0x30] sm:$0xff]  ;;  %v468_v60 = vmax.f32 %v396_v57, 0.0  ;;  %v395_v61 = vld [vmem:[%s1030_s10 + $0x220] sm:$0xff] }
  0x1a   : > { %491 = vmatpush1.msra.mxu0 %v423_v23  ;;  %v394_v62 = vld [vmem:[%s1030_s10 + $0x218] sm:$0xff]  ;;  %v332_v0 = vld [vmem:[%s1030_s10 + $0x28] sm:$0xff]  ;;  %v467_v2 = vmax.f32 %v395_v61, 0.0  ;;  %v393_v4 = vld [vmem:[%s1030_s10 + $0x210] sm:$0xff]  ;;  %v406_v5 = vmax.f32 %v334_v54, 0.0  ;;  %v405_v10 = vmax.f32 %v333_v59, 0.0 }
  0x1b   : > { %492 = vmatprep.subr.mxu0 %v422_v25  ;;  %579 = vmatprep.subr.mxu1 %v470_v55  ;;  %v466_v3 = vmax.f32 %v394_v62, 0.0  ;;  %v331_v6 = vld [vmem:[%s1030_s10 + $0x20] sm:$0xff]  ;;  %v465_v7 = vmax.f32 %v393_v4, 0.0  ;;  %v392_v8 = vld [vmem:[%s1030_s10 + $0x208] sm:$0xff]  ;;  %v330_v11 = vld [vmem:[%s1030_s10 + $0x18] sm:$0xff]  ;;  %v404_v13 = vmax.f32 %v332_v0, 0.0 }
  0x1c   : > { %493 = vmatpush1.msra.mxu0 %v421_v27  ;;  %580 = vmatpush1.msra.mxu1 %v469_v56  ;;  %v391_v9 = vld [vmem:[%s1030_s10 + $0x200] sm:$0xff]  ;;  %v464_v12 = vmax.f32 %v392_v8, 0.0  ;;  %v329_v14 = vld [vmem:[%s1030_s10 + $0x10] sm:$0xff]  ;;  %v403_v16 = vmax.f32 %v331_v6, 0.0  ;;  %v328_v17 = vld [vmem:[%s1030_s10 + $0x8] sm:$0xff]  ;;  %v402_v18 = vmax.f32 %v330_v11, 0.0 }
  0x1d   : > { %494 = vmatprep.subr.mxu0 %v420_v29  ;;  %581 = vmatprep.subr.mxu1 %v468_v60  ;;  %v463_v15 = vmax.f32 %v391_v9, 0.0  ;;  %v327_v19 = vld [vmem:[%s1030_s10] sm:$0xff]  ;;  %v473_v20 = vld [vmem:[%s1173_s2 + $0x10] sm:$0xff]  ;;  %v401_v21 = vmax.f32 %v329_v14, 0.0  ;;  %v390_v22 = vld [vmem:[%s1030_s10 + $0x1f8] sm:$0xff]  ;;  %v400_v23 = vmax.f32 %v328_v17, 0.0 }
  0x1e   : > { %495 = vmatpush1.msra.mxu0 %v419_v31  ;;  %582 = vmatpush1.msra.mxu1 %v467_v2  ;;  %v389_v24 = vld [vmem:[%s1030_s10 + $0x1f0] sm:$0xff]  ;;  %v399_v25 = vmax.f32 %v327_v19, 0.0  ;;  %v388_v26 = vld [vmem:[%s1030_s10 + $0x1e8] sm:$0xff]  ;;  %v462_v27 = vmax.f32 %v390_v22, 0.0  ;;  %v387_v28 = vld [vmem:[%s1030_s10 + $0x1e0] sm:$0xff] }
  0x1f   : > { %496 = vmatprep.subr.mxu0 %v418_v33  ;;  %583 = vmatprep.subr.mxu1 %v466_v3  ;;  %v461_v29 = vmax.f32 %v389_v24, 0.0  ;;  %v386_v30 = vld [vmem:[%s1030_s10 + $0x1d8] sm:$0xff]  ;;  %v460_v31 = vmax.f32 %v388_v26, 0.0  ;;  %v385_v32 = vld [vmem:[%s1030_s10 + $0x1d0] sm:$0xff]  ;;  %v459_v33 = vmax.f32 %v387_v28, 0.0  ;;  %v384_v34 = vld [vmem:[%s1030_s10 + $0x1c8] sm:$0xff] }
  0x20   : > { %497 = vmatpush1.msra.mxu0 %v417_v35  ;;  %584 = vmatpush1.msra.mxu1 %v465_v7  ;;  %v458_v35 = vmax.f32 %v386_v30, 0.0  ;;  %v383_v36 = vld [vmem:[%s1030_s10 + $0x1c0] sm:$0xff]  ;;  %v382_v38 = vld [vmem:[%s1030_s10 + $0x1b8] sm:$0xff]  ;;  %v381_v40 = vld [vmem:[%s1030_s10 + $0x1b0] sm:$0xff] }
  0x21   : > { %498 = vmatprep.subr.mxu0 %v416_v37  ;;  %585 = vmatprep.subr.mxu1 %v464_v12  ;;  %v457_v37 = vmax.f32 %v385_v32, 0.0  ;;  %v380_v42 = vld [vmem:[%s1030_s10 + $0x1a8] sm:$0xff]  ;;  %v379_v44 = vld [vmem:[%s1030_s10 + $0x1a0] sm:$0xff]  ;;  %v378_v46 = vld [vmem:[%s1030_s10 + $0x198] sm:$0xff] }
  0x22   : > { %499 = vmatpush1.msra.mxu0 %v415_v39  ;;  %586 = vmatpush1.msra.mxu1 %v463_v15  ;;  %v456_v39 = vmax.f32 %v384_v34, 0.0  ;;  %v377_v48 = vld [vmem:[%s1030_s10 + $0x190] sm:$0xff]  ;;  %v376_v50 = vld [vmem:[%s1030_s10 + $0x188] sm:$0xff]  ;;  %v450_v51 = vmax.f32 %v378_v46, 0.0  ;;  %v375_v52 = vld [vmem:[%s1030_s10 + $0x180] sm:$0xff] }
  0x23   : > { %500 = vmatprep.subr.mxu0 %v414_v41  ;;  %897 = vmatmul.mubr.msk.f32.vlgmr.msra.gmra.mxu1 %vm480_vm0, %v473_v20  ;;  %v455_v41 = vmax.f32 %v383_v36, 0.0  ;;  %v374_v54 = vld [vmem:[%s1030_s10 + $0x178] sm:$0xff]  ;;  %v448_v55 = vmax.f32 %v376_v50, 0.0  ;;  %v373_v56 = vld [vmem:[%s1030_s10 + $0x170] sm:$0xff]  ;;  %v447_v57 = vmax.f32 %v375_v52, 0.0  ;;  %v371_v60 = vld [vmem:[%s1030_s10 + $0x160] sm:$0xff] }
  0x24   : > { %501 = vmatpush1.msra.mxu0 %v413_v43  ;;  %733 = vmatprep.mubr.f32.mxu1 %v959_v1  ;;  %v454_v43 = vmax.f32 %v382_v38, 0.0  ;;  %v446_v59 = vmax.f32 %v374_v54, 0.0  ;;  %v445_v61 = vmax.f32 %v373_v56, 0.0  ;;  %v370_v62 = vld [vmem:[%s1030_s10 + $0x158] sm:$0xff]  ;;  %v369_v0 = vld [vmem:[%s1030_s10 + $0x150] sm:$0xff]  ;;  %v443_v2 = vmax.f32 %v371_v60, 0.0 }
  0x25   : > { %502 = vmatprep.subr.mxu0 %v412_v45  ;;  %v453_v45 = vmax.f32 %v381_v40, 0.0  ;;  %v368_v3 = vld [vmem:[%s1030_s10 + $0x148] sm:$0xff]  ;;  %v442_v4 = vmax.f32 %v370_v62, 0.0  ;;  %v441_v6 = vmax.f32 %v369_v0, 0.0  ;;  %v366_v7 = vld [vmem:[%s1030_s10 + $0x138] sm:$0xff]  ;;  %v365_v9 = vld [vmem:[%s1030_s10 + $0x130] sm:$0xff] }
  0x26   : > { %503 = vmatpush1.msra.mxu0 %v411_v47  ;;  %v452_v47 = vmax.f32 %v380_v42, 0.0  ;;  %v440_v8 = vmax.f32 %v368_v3, 0.0  ;;  %v364_v11 = vld [vmem:[%s1030_s10 + $0x128] sm:$0xff]  ;;  %v438_v12 = vmax.f32 %v366_v7, 0.0  ;;  %v437_v14 = vmax.f32 %v365_v9, 0.0  ;;  %v362_v15 = vld [vmem:[%s1030_s10 + $0x118] sm:$0xff] }
  0x27   : > { %504 = vmatprep.subr.mxu0 %v410_v49  ;;  %v451_v49 = vmax.f32 %v379_v44, 0.0  ;;  %v361_v17 = vld [vmem:[%s1030_s10 + $0x110] sm:$0xff]  ;;  %v360_v19 = vld [vmem:[%s1030_s10 + $0x108] sm:$0xff]  ;;  %v434_v20 = vmax.f32 %v362_v15, 0.0  ;;  %v631_v42 = vld [vmem:[%s1175_s4 + $0x18] sm:$0xff] }
  0x28   : > { %505 = vmatpush1.msra.mxu0 %v409_v53  ;;  %v449_v53 = vmax.f32 %v377_v48, 0.0  ;;  %v433_v22 = vmax.f32 %v361_v17, 0.0  ;;  %v633_v26 = vld [vmem:[%s1176_s5 + $0x8] sm:$0xff]  ;;  %v760_v52 = vld [vmem:[%s1139_s12 + $0x10] sm:$0xff]  ;;  %v761_v56 = vld [vmem:[%s1139_s12 + $0x18] sm:$0xff] }
  0x29   : > { %506 = vmatprep.subr.mxu0 %v408_v58  ;;  %v372_v58 = vld [vmem:[%s1030_s10 + $0x168] sm:$0xff]  ;;  %643 = vperm.xlu1 %934, %v633_v26   ;;  %v764_v7 = vld [vmem:[%s1139_s12 + $0x30] sm:$0xff] }
  0x2a   : > { %507 = vmatpush1.msra.mxu0 %v407_v63  ;;  %v444_v63 = vmax.f32 %v372_v58, 0.0  ;;  %v629_v40 = vld [vmem:[%s1175_s4 + $0x8] sm:$0xff] }
  0x2b   : > { %508 = vmatprep.subr.mxu0 %v406_v5  ;;  %v367_v5 = vld [vmem:[%s1030_s10 + $0x140] sm:$0xff]  ;;  %v759_v48 = vld [vmem:[%s1139_s12 + $0x8] sm:$0xff] }
  0x2c   : > { %509 = vmatpush1.msra.mxu0 %v405_v10  ;;  %v439_v10 = vmax.f32 %v367_v5, 0.0 }
  0x2d   : > { %510 = vmatprep.subr.mxu0 %v404_v13  ;;  %v363_v13 = vld [vmem:[%s1030_s10 + $0x120] sm:$0xff] }
  0x2e   : > { %511 = vmatpush1.msra.mxu0 %v403_v16  ;;  %v436_v16 = vmax.f32 %v364_v11, 0.0  ;;  %v765_v11 = vld [vmem:[%s1139_s12 + $0x38] sm:$0xff] }
  0x2f   : > { %512 = vmatprep.subr.mxu0 %v402_v18  ;;  %v435_v18 = vmax.f32 %v363_v13, 0.0 }
  0x30   : > { %513 = vmatpush1.msra.mxu0 %v401_v21  ;;  %v359_v21 = vld [vmem:[%s1030_s10 + $0x100] sm:$0xff] }
  0x31   : > { %514 = vmatprep.subr.mxu0 %v400_v23  ;;  %v432_v23 = vmax.f32 %v360_v19, 0.0  ;;  %v431_v24 = vmax.f32 %v359_v21, 0.0 }
  0x32   : > { %515 = vmatpush1.msra.mxu0 %v399_v25  ;;  %v471_v25 = vld [vmem:[%s1173_s2] sm:$0xff] }
  0x33   : > { %516 = vmatprep.subr.mxu0 %v462_v27  ;;  %v634_v27 = vld [vmem:[%s1176_s5 + $0x10] sm:$0xff] }
  0x34   : > { %517 = vmatpush2.msra.mxu0 %v461_v29  ;;  %648 = vperm.xlu1 %934, %v634_v27  }
  0x35   : > { %518 = vmatprep.subr.mxu0 %v460_v31 }
  0x36   : > { %519 = vmatpush2.msra.mxu0 %v459_v33 }
  0x37   : > { %520 = vmatprep.subr.mxu0 %v458_v35 }
  0x38   : > { %521 = vmatpush2.msra.mxu0 %v457_v37 }
  0x39   : > { %522 = vmatprep.subr.mxu0 %v456_v39  ;;  %v628_v39 = vld [vmem:[%s1175_s4] sm:$0xff] }
  0x3a   : > { %523 = vmatpush2.msra.mxu0 %v455_v41  ;;  %v630_v41 = vld [vmem:[%s1175_s4 + $0x10] sm:$0xff] }
  0x3b   : > { %524 = vmatprep.subr.mxu0 %v454_v43 }
  0x3c   : > { %525 = vmatpush2.msra.mxu0 %v453_v45  ;;  %v758_v45 = vld [vmem:[%s1139_s12] sm:$0xff] }
  0x3d   : > { %526 = vmatprep.subr.mxu0 %v452_v47 }
  0x3e   : > { %527 = vmatpush2.msra.mxu0 %v451_v49 }
  0x3f   : > { %528 = vmatprep.subr.mxu0 %v450_v51 }
  0x40   : > { %529 = vmatpush2.msra.mxu0 %v449_v53 }
  0x41   : > { %530 = vmatprep.subr.mxu0 %v448_v55 }
  0x42   : > { %531 = vmatpush2.msra.mxu0 %v447_v57 }
  0x43   : > { %532 = vmatprep.subr.mxu0 %v446_v59 }
  0x44   : > { %533 = vmatpush2.msra.mxu0 %v445_v61  ;;  %v762_v61 = vld [vmem:[%s1139_s12 + $0x20] sm:$0xff] }
  0x45   : > { %534 = vmatprep.subr.mxu0 %v444_v63 }
  0x46   : > { %535 = vmatpush2.msra.mxu0 %v443_v2  ;;  %v763_v2 = vld [vmem:[%s1139_s12 + $0x28] sm:$0xff] }
  0x47   : > { %536 = vmatprep.subr.mxu0 %v442_v4 }
  0x48   : > { %537 = vmatpush2.msra.mxu0 %v441_v6 }
  0x49   : > { %538 = vmatprep.subr.mxu0 %v440_v8 }
  0x4a   : > { %539 = vmatpush2.msra.mxu0 %v439_v10 }
  0x4b   : > { %540 = vmatprep.subr.mxu0 %v438_v12 }
  0x4c   : > { %541 = vmatpush2.msra.mxu0 %v437_v14 }
  0x4d   : > { %542 = vmatprep.subr.mxu0 %v436_v16 }
  0x4e   : > { %543 = vmatpush2.msra.mxu0 %v435_v18 }
  0x4f   : > { %544 = vmatprep.subr.mxu0 %v434_v20 }
  0x50   : > { %545 = vmatpush2.msra.mxu0 %v433_v22 }
  0x51   : > { %546 = vmatprep.subr.mxu0 %v432_v23 }
  0x52   : > { %547 = vmatpush2.msra.mxu0 %v431_v24 }
  0x53   : > { %549 = vmatmul.mubr.f32.vlgmr.msra.gmra.mxu0 %v471_v25 }
  0x8a   : > { %v478_v28 = vpop.permute.xlu0 %477 }
  0x8e   : > { %v639_v43 = vpop.permute.xlu0 %638 }
  0x92   : > { %v654_v5 = vpop.permute.xlu0 %653 }
  0xa4   : > { %v644_v46 = vpop.permute.xlu1 %643 }
  0xaf   : > { %v649_v57 = vpop.permute.xlu1 %648 }
  0xe3   : > { %v621_v30 = vpop.f32.mrf.mxu1 }
  0xe5   : > { %v623_v35 = vpop.f32.mrf.mxu1 }
 0x113   : > { %v550_v29 = vpop.f32.mrf.mxu0 }
 0x114   : > { %v551_v31 = vadd.f32 %v550_v29, %v478_v28 }
 0x115   : > { %v552_v32 = vpop.f32.mrf.mxu0 }
 0x116   : > { %v553_v33 = vadd.f32 %v552_v32, %v478_v28  ;;  %v622_v34 = vadd.f32 %v621_v30, %v551_v31 }
 0x118   : > { %v624_v36 = vadd.f32 %v623_v35, %v553_v33  ;;  %v626_v38 = vmax.f32 %v622_v34, 0.0 }
 0x11a   : > { %v627_v37 = vmax.f32 %v624_v36, 0.0 }
 0x11c   : > { %699 = vmatprep.subr.mxu1 %v627_v37 }
 0x11d   : > { %700 = vmatpush1.msra.mxu1 %v626_v38 }
 0x11e   : > { %898 = vmatmul.mubr.msk.f32.vlgmr.msra.gmra.mxu1 %vm656_vm1, %v628_v39 }
 0x11f   : > { %739 = vmatprep.mubr.f32.mxu1 %v959_v1 }
 0x122   : > { %899 = vmatmul.mubr.msk.f32.gmra.mxu1 %vm656_vm1, %v629_v40 }
 0x123   : > { %745 = vmatprep.mubr.f32.mxu1 %v959_v1 }
 0x126   : > { %900 = vmatmul.mubr.msk.f32.gmra.mxu1 %vm656_vm1, %v630_v41 }
 0x127   : > { %751 = vmatprep.mubr.f32.mxu1 %v959_v1 }
 0x12a   : > { %901 = vmatmul.mubr.msk.f32.gmra.mxu1 %vm656_vm1, %v631_v42 }
 0x1de   : > { %v735_v44 = vpop.f32.mrf.mxu1 }
 0x1df   : > { %v736_v1 = vadd.f32 %v735_v44, %v639_v43 }
 0x1e0   : > { %v737_v47 = vpop.f32.mrf.mxu1 }
 0x1e1   : > { %v766_v49 = vadd.f32 %v758_v45, %v736_v1  ;;  %v738_v50 = vadd.f32 %v737_v47, %v639_v43 }
 0x1e2   : > { %v741_v51 = vpop.f32.mrf.mxu1 }
 0x1e3   : > { %774 = vst [vmem:[%s1145_s15] sm:$0xff] %v766_v49  ;;  %v767_v53 = vadd.f32 %v759_v48, %v738_v50  ;;  %v742_v54 = vadd.f32 %v741_v51, %v644_v46 }
 0x1e4   : > { %v743_v55 = vpop.f32.mrf.mxu1 }
 0x1e5   : > { %775 = vst [vmem:[%s1145_s15 + $0x8] sm:$0xff] %v767_v53  ;;  %v744_v58 = vadd.f32 %v743_v55, %v644_v46  ;;  %v768_v59 = vadd.f32 %v760_v52, %v742_v54 }
 0x1e6   : > { %v747_v60 = vpop.f32.mrf.mxu1 }
 0x1e7   : > { %v769_v62 = vadd.f32 %v761_v56, %v744_v58  ;;  %776 = vst [vmem:[%s1145_s15 + $0x10] sm:$0xff] %v768_v59  ;;  %v748_v63 = vadd.f32 %v747_v60, %v649_v57 }
 0x1e8   : > { %v749_v0 = vpop.f32.mrf.mxu1 }
 0x1e9   : > { %777 = vst [vmem:[%s1145_s15 + $0x18] sm:$0xff] %v769_v62  ;;  %v750_v3 = vadd.f32 %v749_v0, %v649_v57  ;;  %v770_v4 = vadd.f32 %v762_v61, %v748_v63 }
 0x1ea   : > { %v753_v6 = vpop.f32.mrf.mxu1 }
 0x1eb   : > { %v771_v8 = vadd.f32 %v763_v2, %v750_v3  ;;  %778 = vst [vmem:[%s1145_s15 + $0x20] sm:$0xff] %v770_v4  ;;  %v754_v9 = vadd.f32 %v753_v6, %v654_v5 }
 0x1ec   : > { %v755_v10 = vpop.f32.mrf.mxu1 }
 0x1ed   : > { %779 = vst [vmem:[%s1145_s15 + $0x28] sm:$0xff] %v771_v8  ;;  %v772_v12 = vadd.f32 %v764_v7, %v754_v9  ;;  %v756_v13 = vadd.f32 %v755_v10, %v654_v5 }
 0x1ef   : > { %780 = vst [vmem:[%s1145_s15 + $0x30] sm:$0xff] %v772_v12  ;;  %v773_v14 = vadd.f32 %v765_v11, %v756_v13 }
 0x1f1   : > { %781 = vst [vmem:[%s1145_s15 + $0x38] sm:$0xff] %v773_v14 }
 0x1f2 PF: > { %s16_s23 = sadd.s32 1, %s957_s23   ;;  %s1178_s21 = smov %s953_s22 }
 0x1f3   : > { %p13_p5 = scmp.ge.s32.totalorder %s16_s23, 4   ;;  %s1179_s22 = smov %s1181_s24 }
 0x1f5   :  { %15 = sbr.rel (!%p13_p5) target bundleno = 2 (0x2), region = 77 }

</bundles_post_ra>
